<compile_context>
chip_gen: v7x
topology: tpu7x:2x2x1
jax: 0.10.0
libtpu: 0.0.40
codegen_flags: <defaults>
</compile_context>

<pallas_src>
import jax
import jax.numpy as jnp
from jax.experimental import pallas as pl
from jax.experimental.pallas import tpu as pltpu


def odconv_kernel(x_ref, fcw_ref, abi_ref, attw_ref, attb_ref, convw_ref,
                  osb_ref, o_ref):
    x = x_ref[0]                                    # (C1, HW), input dtype (f32/bf16)
    c2, c1 = convw_ref.shape
    hw = x.shape[-1]

    # ---- GAP on the MXU: f32 accumulation without upcasting the slab ----
    ones_col = jnp.ones((hw, 1), x.dtype)
    gap = jnp.dot(x, ones_col, preferred_element_type=jnp.float32) * (1.0 / hw)  # (C1,1)

    # ---- attention head: fc (attn-BN scale prefolded into fcw) + bias, ReLU ----
    a = jnp.maximum(
        jnp.dot(fcw_ref[...], gap, preferred_element_type=jnp.float32)
        + abi_ref[...], 0.0)                        # (Ca, 1)

    # channel_fc and filter_fc stacked into ONE small matmul (temperature == 1.0)
    att = jnp.dot(attw_ref[...], a, preferred_element_type=jnp.float32) + attb_ref[...]
    att = 1.0 / (1.0 + jnp.exp(-att))               # (C1+C2, 1), tiny -> exact sigmoid
    ch_col = att[:c1]                               # (C1, 1) channel attention
    fl_col = att[c1:]                               # (C2, 1) filter attention

    # ---- fold everything into the 1x1 conv weight ----
    # W_eff = diag(fl * bn_scale) @ W @ diag(ch).  The column scaling uses a tiny
    # diag-matmul on the idle MXU, avoiding a sublane->lane relayout of ch.
    r = jax.lax.broadcasted_iota(jnp.int32, (c1, c1), 0)
    c = jax.lax.broadcasted_iota(jnp.int32, (c1, c1), 1)
    diag_ch = jnp.where(r == c, ch_col, 0.0)                           # (C1, C1)
    w_eff = jnp.dot(convw_ref[...], diag_ch,
                    preferred_element_type=jnp.float32)                # W @ diag(ch)
    o_sc = osb_ref[:, 0:1]
    o_bi = osb_ref[:, 1:2]
    w_eff = w_eff * (fl_col * o_sc)                                    # (C2, C1)

    # ---- the only big op: one MXU matmul on the lane-dense activation slab ----
    y = jnp.dot(w_eff.astype(x.dtype), x,
                preferred_element_type=jnp.float32) + o_bi             # (C2, HW)

    # ---- SiLU: sigmoid reciprocal on the EUP slot instead of a VALU divide ----
    o_ref[0] = (y * pl.reciprocal(1.0 + jnp.exp(-y), approx=True)).astype(o_ref.dtype)


def odconv_pallas(x, params):
    B, C1, H, W = x.shape
    HW = H * W
    C2 = params["conv_w"].shape[0]
    Ca = params["fc_w"].shape[0]
    eps = 1e-5

    # lane-dense activation layout: last dim = H*W (256 here, multiple of 128)
    x_flat = x.reshape(B, C1, HW)

    # attention BatchNorm (eval running stats) folded into the fc weight / bias.
    # The PyTorch module skips this BN entirely when batch == 1.
    if B != 1:
        a_sc = params["bn_a_gamma"] * jax.lax.rsqrt(params["bn_a_var"] + eps)
        a_bi = params["bn_a_beta"] - params["bn_a_mean"] * a_sc
    else:
        a_sc = jnp.ones((Ca,), jnp.float32)
        a_bi = jnp.zeros((Ca,), jnp.float32)
    fc_w_eff = params["fc_w"] * a_sc[:, None]                            # (Ca, C1)

    # channel_fc / filter_fc stacked -> one small in-kernel matmul
    att_w = jnp.concatenate([params["ch_w"], params["fl_w"]], axis=0)    # (C1+C2, Ca)
    att_b = jnp.concatenate([params["ch_b"], params["fl_b"]])[:, None]   # (C1+C2, 1)

    # outer BatchNorm (eval) folded to scale/bias, packed as (C2, 2)
    o_sc = params["bn2_gamma"] * jax.lax.rsqrt(params["bn2_var"] + eps)
    o_bi = params["bn2_beta"] - params["bn2_mean"] * o_sc
    out_sb = jnp.stack([o_sc, o_bi], axis=1)                             # (C2, 2)

    # scoped-VMEM budget: double-buffered whole-image in/out slabs + weights
    slab_bytes = 2 * (C1 + C2) * HW * x.dtype.itemsize
    vmem_limit = int(min(max(slab_bytes + (8 << 20), 16 << 20), 64 << 20))

    out = pl.pallas_call(
        odconv_kernel,
        out_shape=jax.ShapeDtypeStruct((B, C2, HW), x.dtype),
        grid_spec=pltpu.PrefetchScalarGridSpec(
            num_scalar_prefetch=0,
            grid=(B,),
            in_specs=[
                pl.BlockSpec((1, C1, HW), lambda b: (b, 0, 0)),      # x slab
                pl.BlockSpec((Ca, C1), lambda b: (0, 0)),            # fc weight (BN-scaled)
                pl.BlockSpec((Ca, 1), lambda b: (0, 0)),             # attn-BN bias
                pl.BlockSpec((C1 + C2, Ca), lambda b: (0, 0)),       # stacked ch/fl fc weight
                pl.BlockSpec((C1 + C2, 1), lambda b: (0, 0)),        # stacked ch/fl fc bias
                pl.BlockSpec((C2, C1), lambda b: (0, 0)),            # 1x1 conv weight
                pl.BlockSpec((C2, 2), lambda b: (0, 0)),             # out-BN [scale, bias]
            ],
            out_specs=pl.BlockSpec((1, C2, HW), lambda b: (b, 0, 0)),
        ),
        compiler_params=pltpu.CompilerParams(
            dimension_semantics=("parallel",),
            vmem_limit_bytes=vmem_limit),
    )(x_flat, fc_w_eff, a_bi.reshape(Ca, 1), att_w, att_b,
      params["conv_w"], out_sb)

    return out.reshape(B, C2, H, W)


def odconv_ref(x, params):
    """Pure-JAX reference mirroring the PyTorch forward (eval-mode BN)."""
    B, C1, H, W = x.shape
    eps = 1e-5
    P = jax.lax.Precision.HIGHEST

    gap = x.mean(axis=(2, 3))                                             # (B, C1)
    a = jnp.einsum("ac,bc->ba", params["fc_w"], gap, precision=P)         # (B, Ca)
    if B != 1:
        a = ((a - params["bn_a_mean"]) * jax.lax.rsqrt(params["bn_a_var"] + eps)
             * params["bn_a_gamma"] + params["bn_a_beta"])
    a = jnp.maximum(a, 0.0)

    ch = jax.nn.sigmoid(jnp.einsum("ca,ba->bc", params["ch_w"], a, precision=P)
                        + params["ch_b"])                                 # (B, C1)
    fl = jax.nn.sigmoid(jnp.einsum("oa,ba->bo", params["fl_w"], a, precision=P)
                        + params["fl_b"])                                 # (B, C2)

    xs = x * ch[:, :, None, None]
    y = jnp.einsum("oc,bchw->bohw", params["conv_w"], xs, precision=P)    # 1x1 conv
    y = y * fl[:, :, None, None]
    y = ((y - params["bn2_mean"][None, :, None, None])
         * jax.lax.rsqrt(params["bn2_var"] + eps)[None, :, None, None]
         * params["bn2_gamma"][None, :, None, None]
         + params["bn2_beta"][None, :, None, None])
    return y * jax.nn.sigmoid(y)


def init_params(key, c1, c2, reduction=0.0625, min_channel=16):
    ca = max(int(c1 * reduction), min_channel)
    k = jax.random.split(key, 14)
    return {
        "fc_w": 0.3 * jax.random.normal(k[0], (ca, c1), jnp.float32),
        "bn_a_gamma": 1.0 + 0.1 * jax.random.normal(k[1], (ca,), jnp.float32),
        "bn_a_beta": 0.1 * jax.random.normal(k[2], (ca,), jnp.float32),
        "bn_a_mean": 0.1 * jax.random.normal(k[3], (ca,), jnp.float32),
        "bn_a_var": jnp.abs(1.0 + 0.1 * jax.random.normal(k[4], (ca,), jnp.float32)),
        "ch_w": 0.3 * jax.random.normal(k[5], (c1, ca), jnp.float32),
        "ch_b": 0.1 * jax.random.normal(k[6], (c1,), jnp.float32),
        "fl_w": 0.3 * jax.random.normal(k[7], (c2, ca), jnp.float32),
        "fl_b": 0.1 * jax.random.normal(k[8], (c2,), jnp.float32),
        "conv_w": 0.2 * jax.random.normal(k[9], (c2, c1), jnp.float32),
        "bn2_gamma": 1.0 + 0.1 * jax.random.normal(k[10], (c2,), jnp.float32),
        "bn2_beta": 0.1 * jax.random.normal(k[11], (c2,), jnp.float32),
        "bn2_mean": 0.1 * jax.random.normal(k[12], (c2,), jnp.float32),
        "bn2_var": jnp.abs(1.0 + 0.1 * jax.random.normal(k[13], (c2,), jnp.float32)),
    }


if __name__ == "__main__":
    key = jax.random.PRNGKey(0)
    kx, kp = jax.random.split(key)

    B, C1, C2, H, W = 2, 32, 32, 16, 16     # attention_channel = max(2, 16) = 16
    x = jax.random.normal(kx, (B, C1, H, W), jnp.float32)
    params = init_params(kp, C1, C2)

    run = jax.jit(odconv_pallas)

    # float32 activation path (tight check vs. HIGHEST-precision f32 reference)
    out = jax.block_until_ready(run(x, params))
    ref = jax.block_until_ready(odconv_ref(x, params))
    assert out.shape == (B, C2, H, W)
    assert jnp.allclose(out, ref, rtol=1e-2, atol=1e-2), \
        float(jnp.max(jnp.abs(out - ref)))

    # bfloat16 activation path: the MXU consumes bf16 straight from the DMA'd
    # slab and the output is stored in bf16 (looser tolerance vs. the f32 ref).
    out_bf16 = jax.block_until_ready(run(x.astype(jnp.bfloat16), params))
    assert out_bf16.dtype == jnp.bfloat16
    err_bf16 = float(jnp.max(jnp.abs(out_bf16.astype(jnp.float32) - ref)))
    assert err_bf16 < 0.1, err_bf16

    print("KERNEL_OK")
</pallas_src>

<mosaic_0001>
module attributes {stable_mosaic.version = 11 : i64} {
  func.func @odconv_kernel(%arg0: i32, %arg1: memref<1x32x256xf32, #tpu.memory_space<vmem>>, %arg2: memref<16x32xf32, #tpu.memory_space<vmem>>, %arg3: memref<16x1xf32, #tpu.memory_space<vmem>>, %arg4: memref<64x16xf32, #tpu.memory_space<vmem>>, %arg5: memref<64x1xf32, #tpu.memory_space<vmem>>, %arg6: memref<32x32xf32, #tpu.memory_space<vmem>>, %arg7: memref<32x2xf32, #tpu.memory_space<vmem>>, %arg8: memref<1x32x256xf32, #tpu.memory_space<vmem>>) attributes {dimension_semantics = [#tpu.dimension_semantics<parallel>], iteration_bounds = array<i64: 2>, scalar_prefetch = 0 : i64, scratch_operands = 0 : i64, tpu.core_type = #tpu.core_type<tc>, window_params = [{transform_indices = @transform_0, window_bounds = array<i64: 1, 32, 256>}, {pipeline_mode = #tpu.pipeline_mode<synchronous>, transform_indices = @transform_1, window_bounds = array<i64: 16, 32>}, {pipeline_mode = #tpu.pipeline_mode<synchronous>, transform_indices = @transform_2, window_bounds = array<i64: 16, 1>}, {pipeline_mode = #tpu.pipeline_mode<synchronous>, transform_indices = @transform_3, window_bounds = array<i64: 64, 16>}, {pipeline_mode = #tpu.pipeline_mode<synchronous>, transform_indices = @transform_4, window_bounds = array<i64: 64, 1>}, {pipeline_mode = #tpu.pipeline_mode<synchronous>, transform_indices = @transform_5, window_bounds = array<i64: 32, 32>}, {pipeline_mode = #tpu.pipeline_mode<synchronous>, transform_indices = @transform_6, window_bounds = array<i64: 32, 2>}, {transform_indices = @transform_7, window_bounds = array<i64: 1, 32, 256>}]} {
    %c0 = arith.constant 0 : index
    %c0_0 = arith.constant 0 : index
    %c0_1 = arith.constant 0 : index
    %0 = vector.load %arg1[%c0, %c0_0, %c0_1] : memref<1x32x256xf32, #tpu.memory_space<vmem>>, vector<1x32x256xf32>
    %1 = vector.shape_cast %0 : vector<1x32x256xf32> to vector<32x256xf32>
    %cst = arith.constant 1.000000e+00 : f32
    %2 = vector.broadcast %cst : f32 to vector<256x1xf32>
    %cst_2 = arith.constant dense<0.000000e+00> : vector<32x1xf32>
    %3 = tpu.matmul %1, %2, %cst_2 {dimension_numbers = #tpu.dot_dimension_numbers<[1], [0], [0], [1], [0, 0, 1, 1], [], []>} : vector<32x256xf32>, vector<256x1xf32>, vector<32x1xf32> -> vector<32x1xf32>
    %cst_3 = arith.constant 3.906250e-03 : f32
    %4 = vector.broadcast %cst_3 : f32 to vector<32x1xf32>
    %5 = arith.mulf %3, %4 : vector<32x1xf32>
    %c0_4 = arith.constant 0 : index
    %c0_5 = arith.constant 0 : index
    %6 = vector.load %arg2[%c0_4, %c0_5] : memref<16x32xf32, #tpu.memory_space<vmem>>, vector<16x32xf32>
    %cst_6 = arith.constant dense<0.000000e+00> : vector<16x1xf32>
    %7 = tpu.matmul %6, %5, %cst_6 {dimension_numbers = #tpu.dot_dimension_numbers<[1], [0], [0], [1], [0, 0, 1, 1], [], []>} : vector<16x32xf32>, vector<32x1xf32>, vector<16x1xf32> -> vector<16x1xf32>
    %c0_7 = arith.constant 0 : index
    %c0_8 = arith.constant 0 : index
    %8 = vector.load %arg3[%c0_7, %c0_8] : memref<16x1xf32, #tpu.memory_space<vmem>>, vector<16x1xf32>
    %9 = arith.addf %7, %8 : vector<16x1xf32>
    %cst_9 = arith.constant 0.000000e+00 : f32
    %10 = vector.broadcast %cst_9 : f32 to vector<16x1xf32>
    %11 = arith.maximumf %9, %10 : vector<16x1xf32>
    %c0_10 = arith.constant 0 : index
    %c0_11 = arith.constant 0 : index
    %12 = vector.load %arg4[%c0_10, %c0_11] : memref<64x16xf32, #tpu.memory_space<vmem>>, vector<64x16xf32>
    %cst_12 = arith.constant dense<0.000000e+00> : vector<64x1xf32>
    %13 = tpu.matmul %12, %11, %cst_12 {dimension_numbers = #tpu.dot_dimension_numbers<[1], [0], [0], [1], [0, 0, 1, 1], [], []>} : vector<64x16xf32>, vector<16x1xf32>, vector<64x1xf32> -> vector<64x1xf32>
    %c0_13 = arith.constant 0 : index
    %c0_14 = arith.constant 0 : index
    %14 = vector.load %arg5[%c0_13, %c0_14] : memref<64x1xf32, #tpu.memory_space<vmem>>, vector<64x1xf32>
    %15 = arith.addf %13, %14 : vector<64x1xf32>
    %cst_15 = arith.constant 0.000000e+00 : f32
    %16 = vector.broadcast %cst_15 : f32 to vector<64x1xf32>
    %17 = arith.subf %16, %15 : vector<64x1xf32>
    %18 = math.exp %17 : vector<64x1xf32>
    %cst_16 = arith.constant 1.000000e+00 : f32
    %19 = vector.broadcast %cst_16 : f32 to vector<64x1xf32>
    %20 = arith.addf %19, %18 : vector<64x1xf32>
    %cst_17 = arith.constant 1.000000e+00 : f32
    %21 = vector.broadcast %cst_17 : f32 to vector<64x1xf32>
    %22 = arith.divf %21, %20 : vector<64x1xf32>
    %23 = vector.extract_strided_slice %22 {offsets = [0, 0], sizes = [32, 1], strides = [1, 1]} : vector<64x1xf32> to vector<32x1xf32>
    %24 = vector.extract_strided_slice %22 {offsets = [32, 0], sizes = [32, 1], strides = [1, 1]} : vector<64x1xf32> to vector<32x1xf32>
    %25 = tpu.iota {dimensions = array<i32: 0>} : vector<32x32xi32>
    %26 = tpu.iota {dimensions = array<i32: 1>} : vector<32x32xi32>
    %27 = arith.cmpi eq, %25, %26 : vector<32x32xi32>
    %cst_18 = arith.constant 0.000000e+00 : f32
    %28 = vector.shape_cast %23 : vector<32x1xf32> to vector<32x1xf32>
    %29 = vector.broadcast %28 : vector<32x1xf32> to vector<32x32xf32>
    %30 = vector.broadcast %cst_18 : f32 to vector<32x32xf32>
    %31 = arith.select %27, %29, %30 : vector<32x32xi1>, vector<32x32xf32>
    %c0_19 = arith.constant 0 : index
    %c0_20 = arith.constant 0 : index
    %32 = vector.load %arg6[%c0_19, %c0_20] : memref<32x32xf32, #tpu.memory_space<vmem>>, vector<32x32xf32>
    %cst_21 = arith.constant dense<0.000000e+00> : vector<32x32xf32>
    %33 = tpu.matmul %32, %31, %cst_21 {dimension_numbers = #tpu.dot_dimension_numbers<[1], [0], [0], [1], [0, 0, 1, 1], [], []>} : vector<32x32xf32>, vector<32x32xf32>, vector<32x32xf32> -> vector<32x32xf32>
    %c0_22 = arith.constant 0 : index
    %c0_23 = arith.constant 0 : index
    %34 = vector.load %arg7[%c0_22, %c0_23] : memref<32x2xf32, #tpu.memory_space<vmem>>, vector<32x1xf32>
    %c0_24 = arith.constant 0 : index
    %c1 = arith.constant 1 : index
    %35 = vector.load %arg7[%c0_24, %c1] : memref<32x2xf32, #tpu.memory_space<vmem>>, vector<32x1xf32>
    %36 = arith.mulf %24, %34 : vector<32x1xf32>
    %37 = vector.broadcast %36 : vector<32x1xf32> to vector<32x32xf32>
    %38 = arith.mulf %33, %37 : vector<32x32xf32>
    %cst_25 = arith.constant dense<0.000000e+00> : vector<32x256xf32>
    %39 = tpu.matmul %38, %1, %cst_25 {dimension_numbers = #tpu.dot_dimension_numbers<[1], [0], [0], [1], [0, 0, 1, 1], [], []>} : vector<32x32xf32>, vector<32x256xf32>, vector<32x256xf32> -> vector<32x256xf32>
    %40 = vector.broadcast %35 : vector<32x1xf32> to vector<32x256xf32>
    %41 = arith.addf %39, %40 : vector<32x256xf32>
    %cst_26 = arith.constant 0.000000e+00 : f32
    %42 = vector.broadcast %cst_26 : f32 to vector<32x256xf32>
    %43 = arith.subf %42, %41 : vector<32x256xf32>
    %44 = math.exp %43 : vector<32x256xf32>
    %cst_27 = arith.constant 1.000000e+00 : f32
    %45 = vector.broadcast %cst_27 : f32 to vector<32x256xf32>
    %46 = arith.addf %45, %44 : vector<32x256xf32>
    %47 = tpu.reciprocal %46 {approx = true} : vector<32x256xf32> -> vector<32x256xf32>
    %48 = arith.mulf %41, %47 : vector<32x256xf32>
    %c0_28 = arith.constant 0 : index
    %c0_29 = arith.constant 0 : index
    %c0_30 = arith.constant 0 : index
    %49 = vector.load %arg8[%c0_28, %c0_29, %c0_30] : memref<1x32x256xf32, #tpu.memory_space<vmem>>, vector<1x32x256xf32>
    %50 = vector.shape_cast %49 : vector<1x32x256xf32> to vector<32x256xf32>
    %51 = vector.shape_cast %48 : vector<32x256xf32> to vector<1x32x256xf32>
    tpu.vector_store %arg8[%c0_28, %c0_29, %c0_30], %51 {strides = array<i32>} : memref<1x32x256xf32, #tpu.memory_space<vmem>>, vector<1x32x256xf32>,
    return
  }
  func.func @transform_0(%arg0: i32) -> (i32, i32, i32) {
    %c0_i32 = arith.constant 0 : i32
    %c0_i32_0 = arith.constant 0 : i32
    %c0_i32_1 = arith.constant 0 : i32
    return %arg0, %c0_i32, %c0_i32_0 : i32, i32, i32
  }
  func.func @transform_1(%arg0: i32) -> (i32, i32) {
    %c0_i32 = arith.constant 0 : i32
    %c0_i32_0 = arith.constant 0 : i32
    %c0_i32_1 = arith.constant 0 : i32
    return %c0_i32, %c0_i32_0 : i32, i32
  }
  func.func @transform_2(%arg0: i32) -> (i32, i32) {
    %c0_i32 = arith.constant 0 : i32
    %c0_i32_0 = arith.constant 0 : i32
    %c0_i32_1 = arith.constant 0 : i32
    return %c0_i32, %c0_i32_0 : i32, i32
  }
  func.func @transform_3(%arg0: i32) -> (i32, i32) {
    %c0_i32 = arith.constant 0 : i32
    %c0_i32_0 = arith.constant 0 : i32
    %c0_i32_1 = arith.constant 0 : i32
    return %c0_i32, %c0_i32_0 : i32, i32
  }
  func.func @transform_4(%arg0: i32) -> (i32, i32) {
    %c0_i32 = arith.constant 0 : i32
    %c0_i32_0 = arith.constant 0 : i32
    %c0_i32_1 = arith.constant 0 : i32
    return %c0_i32, %c0_i32_0 : i32, i32
  }
  func.func @transform_5(%arg0: i32) -> (i32, i32) {
    %c0_i32 = arith.constant 0 : i32
    %c0_i32_0 = arith.constant 0 : i32
    %c0_i32_1 = arith.constant 0 : i32
    return %c0_i32, %c0_i32_0 : i32, i32
  }
  func.func @transform_6(%arg0: i32) -> (i32, i32) {
    %c0_i32 = arith.constant 0 : i32
    %c0_i32_0 = arith.constant 0 : i32
    %c0_i32_1 = arith.constant 0 : i32
    return %c0_i32, %c0_i32_0 : i32, i32
  }
  func.func @transform_7(%arg0: i32) -> (i32, i32, i32) {
    %c0_i32 = arith.constant 0 : i32
    %c0_i32_0 = arith.constant 0 : i32
    %c0_i32_1 = arith.constant 0 : i32
    return %arg0, %c0_i32, %c0_i32_0 : i32, i32, i32
  }
}

</mosaic_0001>

<bundles_post_ra>
// kernel: odconv_pallas.1
= control target key start
LH: loop header
LB: loop body
LE: loop exit
PB: predicated region body
PF: predicated region fallthrough
CT: control target
= control target key end

     0   :  { %s1392_s24 = smov 0   ;;  %s1578_s0 = inlined_call_operand.vmem [shape: f32[2,32,256], index: 0, kind: input, shape index: {}]   ;;  %s1579_s1 = inlined_call_operand.vmem [shape: f32[16,32], index: 1, kind: input, shape index: {}]   ;;  %s1580_s2 = inlined_call_operand.vmem [shape: f32[16,1], index: 2, kind: input, shape index: {}]   ;;  %s1581_s3 = inlined_call_operand.vmem [shape: f32[64,16], index: 3, kind: input, shape index: {}]   ;;  %s1582_s4 = inlined_call_operand.vmem [shape: f32[64,1], index: 4, kind: input, shape index: {}]   ;;  %s1583_s5 = inlined_call_operand.vmem [shape: f32[32,32], index: 5, kind: input, shape index: {}]   ;;  %s1584_s6 = inlined_call_operand.vmem [shape: f32[32,2], index: 6, kind: input, shape index: {}]   ;;  %s1585_s7 = inlined_call_operand.vmem [shape: f32[2,32,256], index: 7, kind: output, shape index: {}]  }
   0x1 LB: > { %s1058_s25 = sadd.s32 4294967295, %s1346_s24   ;;  %p1062_p0 = scmp.ge.s32.totalorder %s1346_s24, 1  ;;  %s1346_s24 = sphi %s1392_s24, %s17_s24  }
   0x2   : > { %p237_p1 = scmp.lt.s32.totalorder %s1346_s24, 3 }
   0x4   : > { %p238_p2 = pnand %p1062_p0, %p237_p1 }
   0x5   : > { %p269_p3 = scmp.lt.s32.totalorder (!%p238_p2), %s1058_s25, 1  ;;  %v1348_v0 = vmov (!%p238_p2), 1.0|1.0   ;;  %v376_v13 = vld [vmem:[%s1579_s1] sm:$0xff] (!%p238_p2)  ;;  %vm380_vm0 = vcmask (!%p238_p2), 261120   ;;  %v377_v32 = vld [vmem:[%s1579_s1 + $0x8] sm:$0xff] (!%p238_p2) }
   0x6   : > { %241 = sbr.rel (%p238_p2) target bundleno = 1356 (0x54c), region = 48  ;;  %1202 = vmatprep.subr.bf16.mxu0 (!%p238_p2), %v1348_v0  ;;  %1169 = vmatprep.mubr.msk.f32.mxu1 (!%p238_p2), %vm380_vm0, %v376_v13  ;;  %v464_v33 = vld [vmem:[%s1581_s3] sm:$0xff] (!%p238_p2)  ;;  %vm480_vm1 = vcmask (!%p238_p2), 130048   ;;  %v379_v34 = vld [vmem:[%s1580_s2 + $0x8] sm:$0xff] (!%p238_p2)  ;;  %v466_v44 = vld [vmem:[%s1581_s3 + $0x10] sm:$0xff] (!%p238_p2)  ;;  %v1349_v50 = vmov (!%p238_p2), 0  }
   0x7   : > { %1203 = vmatpush3.bf16.msra.mxu0 (!%p238_p2), %v1348_v0  ;;  %v378_v35 = vld [vmem:[%s1580_s2] sm:$0xff] (!%p238_p2)  ;;  %v465_v43 = vld [vmem:[%s1581_s3 + $0x8] sm:$0xff] (!%p238_p2)  ;;  %v467_v45 = vld [vmem:[%s1581_s3 + $0x18] sm:$0xff] (!%p238_p2)  ;;  %1262 = vset.pattern.permute.xlu0 (!%p238_p2), %v1349_v50 }
   0x8   : > { %1204 = vmatprep.subr.bf16.mxu0 (!%p238_p2), %v1348_v0  ;;  %v468_v46 = vld [vmem:[%s1581_s3 + $0x20] sm:$0xff] (!%p238_p2)  ;;  %v469_v47 = vld [vmem:[%s1581_s3 + $0x28] sm:$0xff] (!%p238_p2)  ;;  %v470_v48 = vld [vmem:[%s1581_s3 + $0x30] sm:$0xff] (!%p238_p2)  ;;  %1273 = vset.pattern.permute.xlu1 (!%p238_p2), %v1349_v50 }
   0x9   : > { %v471_v49 = vld [vmem:[%s1581_s3 + $0x38] sm:$0xff] (!%p238_p2)  ;;  %v473_v51 = vld [vmem:[%s1582_s4 + $0x8] sm:$0xff] (!%p238_p2)  ;;  %v472_v52 = vld [vmem:[%s1582_s4] sm:$0xff] (!%p238_p2) }
   0xa   : > { %v475_v57 = vld [vmem:[%s1582_s4 + $0x18] sm:$0xff] (!%p238_p2)  ;;  %v474_v59 = vld [vmem:[%s1582_s4 + $0x10] sm:$0xff] (!%p238_p2) }
   0xb   : > { %1205 = vmatpush3.bf16.msra.mxu0 (!%p238_p2), %v1348_v0 }
   0xc   : > { %1206 = vmatprep.subr.bf16.mxu0 (!%p238_p2), %v1348_v0 }
   0xd   : > { %s1587_s25 = smov (!%p269_p3, %s1058_s25), 1 }
   0xe   : > { %s1091_s26 = sshll.u32 %s1587_s25, 6 }
   0xf   : > { %s273_s29 = scalar_lea.vmem %s1578_s0, %s1091_s26  ;;  %1207 = vmatpush3.bf16.msra.mxu0 %v1348_v0  ;;  %s278_s28 = scalar_lea.vmem %s1585_s7, %s1091_s26 }
  0x10   : > { %v1408_v1 = vld [vmem:[%s273_s29 + $0x8] sm:$0xff]  ;;  %v1410_v2 = vld [vmem:[%s273_s29 + $0x18] sm:$0xff]  ;;  %v1415_v4 = vld [vmem:[%s273_s29] sm:$0xff]  ;;  %1208 = vmatprep.subr.bf16.mxu0 %v1348_v0 }
  0x11   : > { %351 = vmatprep.mubr.f32.mxu0 %v1408_v1  ;;  %v1242_v3 = vpack.c.bf16 %v1410_v2, %v1408_v1  ;;  %v1417_v5 = vld [vmem:[%s273_s29 + $0x10] sm:$0xff]  ;;  %v1419_v6 = vld [vmem:[%s273_s29 + $0x28] sm:$0xff]  ;;  %v1423_v8 = vld [vmem:[%s273_s29 + $0x20] sm:$0xff]  ;;  %v1350_v1 = vmov 0.0  }
  0x12   : > { %v1244_v7 = vpack.c.bf16 %v1417_v5, %v1415_v4  ;;  %v1425_v9 = vld [vmem:[%s273_s29 + $0x38] sm:$0xff]  ;;  %v1427_v10 = vld [vmem:[%s273_s29 + $0x30] sm:$0xff] }
  0x13   : > { %v1246_v11 = vpack.c.bf16 %v1425_v9, %v1419_v6  ;;  %v1248_v12 = vpack.c.bf16 %v1427_v10, %v1423_v8  ;;  %1209 = vmatpush3.bf16.msra.mxu0 %v1348_v0 }
  0x14   : > { %1210 = vmatprep.subr.bf16.mxu0 %v1348_v0 }
  0x17   : > { %1211 = vmatpush3.bf16.msra.mxu0 %v1348_v0 }
  0x18   : > { %1212 = vmatprep.subr.bf16.mxu0 %v1348_v0 }
  0x1b   : > { %1213 = vmatpush3.bf16.msra.mxu0 %v1348_v0 }
  0x1c   : > { %1214 = vmatprep.subr.bf16.mxu0 %v1348_v0 }
  0x1f   : > { %1215 = vmatpush3.bf16.msra.mxu0 %v1348_v0 }
  0x20   : > { %1216 = vmatprep.subr.bf16.mxu0 %v1348_v0 }
  0x23   : > { %1217 = vmatpush3.bf16.msra.mxu0 %v1348_v0 }
  0x26   : > { %352 = vmatmul.mubr.f32.vlgmr.msra.gmra.mrb[0].mxu0 %v1415_v4 }
  0x27   : > { %356 = vmatprep.mubr.f32.mxu0 %v1410_v2  ;;  %v1351_v2 = vmov 1  }
  0x2a   : > { %357 = vmatmul.mubr.f32.gmra.mrb[2].mxu0 %v1417_v5 }
  0x2b   : > { %361 = vmatprep.mubr.f32.mxu0 %v1419_v6 }
  0x2e   : > { %362 = vmatmul.mubr.f32.gmra.mrb[4].mxu0 %v1423_v8 }
  0x2f   : > { %366 = vmatprep.mubr.f32.mxu0 %v1425_v9 }
  0x32   : > { %367 = vmatmul.mubr.f32.gmra.mrb[6].mxu0 %v1427_v10 }
  0xf9   : > { %v1125_v14 = vpop.f32.mrb[0].mxu0 }
  0xfa   : > { %v1126_v15 = vpop.f32.mrb[1].mxu0 }
  0xfb   : > { %v1127_v16 = vadd.f32 %v1126_v15, %v1125_v14 }
  0xfd   : > { %v1128_v17 = vpop.f32.mrb[2].mxu0  ;;  %v372_v20 = vmul.f32 0.00390625, %v1127_v16  ;;  %v476_v16 = vld [vmem:[%s1582_s4 + $0x20] sm:$0xff] }
  0xfe   : > { %v1129_v18 = vpop.f32.mrb[3].mxu0 }
  0xff   : > { %v1130_v19 = vadd.f32 %v1129_v18, %v1128_v17  ;;  %v477_v18 = vld [vmem:[%s1582_s4 + $0x28] sm:$0xff] }
 0x101   : > { %v373_v21 = vmul.f32 0.00390625, %v1130_v19  ;;  %v1131_v22 = vpop.f32.mrb[4].mxu0 }
 0x102   : > { %v1132_v23 = vpop.f32.mrb[5].mxu0 }
 0x103   : > { %v1133_v24 = vadd.f32 %v1132_v23, %v1131_v22  ;;  %v1218_v25 = vpack.c.bf16 %v373_v21, %v372_v20 }
 0x105   : > { %v1134_v26 = vpop.f32.mrb[6].mxu0  ;;  %1219 = vmatprep.subr.bf16.mxu1 %v1218_v25  ;;  %v374_v29 = vmul.f32 0.00390625, %v1133_v24 }
 0x106   : > { %v1135_v27 = vpop.f32.mrb[7].mxu0  ;;  %1221 = vmatpush3.bf16.msra.mxu1 %v1218_v25  ;;  %v478_v25 = vld [vmem:[%s1582_s4 + $0x30] sm:$0xff] }
 0x107   : > { %v1136_v28 = vadd.f32 %v1135_v27, %v1134_v26  ;;  %v479_v27 = vld [vmem:[%s1582_s4 + $0x38] sm:$0xff] }
 0x109   : > { %v375_v30 = vmul.f32 0.00390625, %v1136_v28 }
 0x10b   : > { %v1222_v31 = vpack.c.bf16 %v375_v30, %v374_v29 }
 0x10d   : > { %1223 = vmatprep.subr.bf16.mxu1 %v1222_v31 }
 0x10e   : > { %1225 = vmatpush3.bf16.msra.mxu1 %v1222_v31 }
 0x111   : > { %1170 = vmatmul.mubr.msk.f32.vlgmr.msra.gmra.mrb[0].mxu1 %vm380_vm0, %v377_v32 }
 0x112   : > { %1176 = vmatprep.mubr.msk.f32.mxu1 %vm480_vm1, %v464_v33 }
 0x1e4   : > { %v1171_v36 = vpop.f32.mrb[0].mxu1 }
 0x1e5   : > { %v459_v37 = vadd.f32 %v1171_v36, %v379_v34  ;;  %v453_v38 = vpop.f32.mrb[1].mxu1 }
 0x1e6   : > { %v454_v39 = vadd.f32 %v453_v38, %v378_v35 }
 0x1e7   : > { %v463_v40 = vmax.f32 %v459_v37, 0.0 }
 0x1e8   : > { %v462_v41 = vmax.f32 %v454_v39, 0.0 }
 0x1ea   : > { %v1226_v42 = vpack.c.bf16 %v463_v40, %v462_v41 }
 0x1ec   : > { %1227 = vmatprep.subr.bf16.mxu1 %v1226_v42 }
 0x1ed   : > { %1229 = vmatpush3.bf16.msra.mxu1 %v1226_v42 }
 0x1f0   : > { %1177 = vmatmul.mubr.msk.f32.vlgmr.msra.gmra.mrb[2].mxu1 %vm480_vm1, %v465_v43 }
 0x1f1   : > { %1179 = vmatprep.mubr.msk.f32.mxu1 %vm480_vm1, %v466_v44 }
 0x1f4   : > { %1180 = vmatmul.mubr.msk.f32.gmra.mrb[4].mxu1 %vm480_vm1, %v467_v45 }
 0x1f5   : > { %1182 = vmatprep.mubr.msk.f32.mxu1 %vm480_vm1, %v468_v46 }
 0x1f8   : > { %1183 = vmatmul.mubr.msk.f32.gmra.mrb[6].mxu1 %vm480_vm1, %v469_v47 }
 0x1f9   : > { %1185 = vmatprep.mubr.msk.f32.mxu1 %vm480_vm1, %v470_v48 }
 0x1fc   : > { %1186 = vmatmul.mubr.msk.f32.gmra.mrb[8].mxu1 %vm480_vm1, %v471_v49 }
 0x2c3   : > { %v1178_v53 = vpop.f32.mrb[2].mxu1 }
 0x2c4   : > { %v577_v54 = vadd.f32 %v1178_v53, %v473_v51  ;;  %v571_v55 = vpop.f32.mrb[3].mxu1 }
 0x2c5   : > { %v572_v56 = vadd.f32 %v571_v55, %v472_v52 }
 0x2c6   : > { %v611_v58 = vsub.f32 0.0, %v577_v54 }
 0x2c7   : > { %v610_v60 = vsub.f32 0.0, %v572_v56  ;;  %v1181_v61 = vpop.f32.mrb[4].mxu1 }
 0x2c8   : > { %v620_v62 = vmul.f32 1.442695, %v611_v58  ;;  %v587_v63 = vadd.f32 %v1181_v61, %v475_v57  ;;  %v581_v0 = vpop.f32.mrb[5].mxu1  ;;  %v796_v61 = vld [vmem:[%s1584_s6 + $0x10] sm:$0xff] }
 0x2c9   : > { %v618_v13 = vmul.f32 1.442695, %v610_v60  ;;  %v582_v14 = vadd.f32 %v581_v0, %v474_v59 }
 0x2ca   : > { %1276 = vpow2.f32 %v620_v62  ;;  %v613_v15 = vsub.f32 0.0, %v587_v63  ;;  %v693_v62 = vld [vmem:[%s1583_s5] sm:$0xff] }
 0x2cb   : > { %1278 = vpow2.f32 %v618_v13  ;;  %v612_v17 = vsub.f32 0.0, %v582_v14  ;;  %v1184_v19 = vpop.f32.mrb[6].mxu1  ;;  %1196 = vmatprep.mubr.msk.f32.mxu1 %vm380_vm0, %v693_v62 }
 0x2cc   : > { %v624_v20 = vmul.f32 1.442695, %v613_v15  ;;  %v591_v21 = vpop.f32.mrb[7].mxu1  ;;  %v597_v24 = vadd.f32 %v1184_v19, %v477_v18  ;;  %v794_v15 = vld [vmem:[%s1584_s6] sm:$0xff] }
 0x2cd   : > { %v622_v22 = vmul.f32 1.442695, %v612_v17  ;;  %v592_v23 = vadd.f32 %v591_v21, %v476_v16  ;;  %v795_v16 = vld [vmem:[%s1584_s6 + $0x8] sm:$0xff] }
 0x2ce   : > { %1280 = vpow2.f32 %v624_v20  ;;  %v615_v31 = vsub.f32 0.0, %v597_v24  ;;  %v797_v20 = vld [vmem:[%s1584_s6 + $0x18] sm:$0xff] }
 0x2cf   : > { %1282 = vpow2.f32 %v622_v22  ;;  %v614_v26 = vsub.f32 0.0, %v592_v23  ;;  %v1187_v28 = vpop.f32.mrb[8].mxu1  ;;  %v658_v22 = vlaneseq }
 0x2d0   : > { %v601_v29 = vpop.f32.mrb[9].mxu1  ;;  %v607_v33 = vadd.f32 %v1187_v28, %v479_v27  ;;  %v628_v40 = vmul.f32 1.442695, %v615_v31 }
 0x2d1   : > { %v602_v30 = vadd.f32 %v601_v29, %v478_v25  ;;  %v626_v32 = vmul.f32 1.442695, %v614_v26  ;;  %v659_v23 = vshrl.u32 %v658_v22, 7  ;;  %v664_v25 = vand.u32 127, %v658_v22 }
 0x2d2   : > { %v617_v41 = vsub.f32 0.0, %v607_v33 }
 0x2d3   : > { %v616_v34 = vsub.f32 0.0, %v602_v30  ;;  %1284 = vpow2.f32 %v626_v32  ;;  %v660_v24 = vadd.s32 8, %v659_v23  ;;  %vm665_vm2 = vcmp.eq.s32.totalorder %v659_v23, %v664_v25 }
 0x2d4   : > { %v1277_v35 = vpop.eup %1276  ;;  %v632_v46 = vmul.f32 1.442695, %v617_v41  ;;  %v661_v26 = vadd.s32 16, %v659_v23  ;;  %v662_v27 = vadd.s32 24, %v659_v23 }
 0x2d5   : > { %v1279_v36 = vpop.eup %1278  ;;  %v635_v37 = vadd.f32 1.0, %v1277_v35  ;;  %v630_v38 = vmul.f32 1.442695, %v616_v34  ;;  %vm666_vm3 = vcmp.eq.s32.totalorder %v660_v24, %v664_v25 }
 0x2d6   : > { %v634_v39 = vadd.f32 1.0, %v1279_v36  ;;  %vm1231_vm4 = vmpackc.low %vm666_vm3, %vm665_vm2  ;;  %vm667_vm5 = vcmp.eq.s32.totalorder %v661_v26, %v664_v25  ;;  %vm668_vm6 = vcmp.eq.s32.totalorder %v662_v27, %v664_v25  ;;  %v694_v36 = vld [vmem:[%s1583_s5 + $0x8] sm:$0xff] }
 0x2d7   : > { %1286 = vrcp.f32 %v635_v37  ;;  %vm1237_vm7 = vmpackc.low %vm668_vm6, %vm667_vm5  ;;  %v695_v37 = vld [vmem:[%s1583_s5 + $0x10] sm:$0xff] }
 0x2d8   : > { %v1281_v42 = vpop.eup %1280  ;;  %1288 = vrcp.f32 %v634_v39 }
 0x2d9   : > { %v1283_v43 = vpop.eup %1282  ;;  %v637_v44 = vadd.f32 1.0, %v1281_v42  ;;  %1290 = vpow2.f32 %v630_v38  ;;  %v696_v38 = vld [vmem:[%s1583_s5 + $0x18] sm:$0xff] }
 0x2da   : > { %v636_v45 = vadd.f32 1.0, %v1283_v43  ;;  %1292 = vpow2.f32 %v628_v40 }
 0x2db   : > { %1294 = vrcp.f32 %v637_v44 }
 0x2dc   : > { %1296 = vrcp.f32 %v636_v45 }
 0x2dd   : > { %1298 = vpow2.f32 %v632_v46  ;;  %v1285_v47 = vpop.eup %1284 }
 0x2de   : > { %v638_v55 = vadd.f32 1.0, %v1285_v47 }
 0x2e1   : > { %v1287_v48 = vpop.eup %1286 }
 0x2e2   : > { %v1289_v49 = vpop.eup %1288 }
 0x2e3   : > { %v1291_v50 = vpop.eup %1290  ;;  %v1263_v51 = vpack.i.bf16 %v1287_v48, %v1289_v49 }
 0x2e4   : > { %v1293_v52 = vpop.eup %1292  ;;  %v640_v53 = vadd.f32 1.0, %v1291_v50 }
 0x2e5   : > { %v1295_v54 = vpop.eup %1294  ;;  %1264 = vperm.xlu0 %1262, %v1263_v51   ;;  %v639_v57 = vadd.f32 1.0, %v1293_v52 }
 0x2e6   : > { %v1297_v56 = vpop.eup %1296  ;;  %1300 = vrcp.f32 %v640_v53 }
 0x2e7   : > { %v1268_v58 = vpack.i.bf16 %v1295_v54, %v1297_v56  ;;  %v1299_v59 = vpop.eup %1298  ;;  %1302 = vrcp.f32 %v638_v55 }
 0x2e8   : > { %1304 = vrcp.f32 %v639_v57  ;;  %v641_v60 = vadd.f32 1.0, %v1299_v59 }
 0x2e9   : > { %1269 = vperm.xlu0 %1262, %v1268_v58  }
 0x2ea   : > { %1306 = vrcp.f32 %v641_v60 }
 0x2f0   : > { %v1301_v63 = vpop.eup %1300 }
 0x2f1   : > { %v800_v0 = vmul.f32 %v1301_v63, %v796_v61  ;;  %v1303_v13 = vpop.eup %1302 }
 0x2f2   : > { %v1305_v14 = vpop.eup %1304  ;;  %v798_v17 = vmul.f32 %v1303_v13, %v794_v15 }
 0x2f3   : > { %814 = vperm.xlu0 %1262, %v800_v0   ;;  %v799_v18 = vmul.f32 %v1305_v14, %v795_v16 }
 0x2f4   : > { %804 = vperm.xlu1 %1273, %v798_v17   ;;  %v1307_v19 = vpop.eup %1306 }
 0x2f5   : > { %v801_v21 = vmul.f32 %v1307_v19, %v797_v20 }
 0x2f7   : > { %1274 = vset.pattern.permute.xlu0 %v1351_v2 }
 0x2f8   : > { %809 = vperm.xlu1 %1273, %v799_v18   ;;  %828 = vperm.xlu0 %1274, %v794_v15  }
 0x2fc   : > { %819 = vperm.xlu1 %1273, %v801_v21   ;;  %843 = vperm.xlu0 %1274, %v797_v20  }
 0x300   : > { %1275 = vset.pattern.permute.xlu1 %v1351_v2 }
 0x301   : > { %833 = vperm.xlu1 %1275, %v795_v16  }
 0x305   : > { %838 = vperm.xlu1 %1275, %v796_v61  }
 0x364   : > { %v1265_v28 = vpop.permute.xlu0 %1264 }
 0x365   : > { %v1267_v29 = vunpack.i.h.bf16 %v1265_v28  ;;  %v1266_v30 = vunpack.i.l.bf16 %v1265_v28 }
 0x367   : > { %v1230_v31 = vpack.c.bf16 %v1267_v29, %v1266_v30 }
 0x368   : > { %v1270_v32 = vpop.permute.xlu0 %1269 }
 0x369   : > { %v1272_v33 = vunpack.i.h.bf16 %v1270_v32  ;;  %v1271_v34 = vunpack.i.l.bf16 %v1270_v32  ;;  %1232 = vmatprep.subr.msk.bf16.mxu1 %vm1231_vm4, %v1230_v31 }
 0x36a   : > { %1235 = vmatpush3.bf16.msk.msra.mxu1 %vm1231_vm4, %v1230_v31 }
 0x36b   : > { %v1236_v35 = vpack.c.bf16 %v1272_v33, %v1271_v34 }
 0x36d   : > { %1238 = vmatprep.subr.msk.bf16.mxu1 %vm1237_vm7, %v1236_v35 }
 0x36e   : > { %1241 = vmatpush3.bf16.msk.msra.mxu1 %vm1237_vm7, %v1236_v35 }
 0x36f   : > { %1243 = vmatprep.subr.bf16.mxu1 %v1242_v3 }
 0x371   : > { %1197 = vmatmul.mubr.msk.f32.vlgmr.msra.gmra.mrb[10].mxu1 %vm380_vm0, %v694_v36 }
 0x372   : > { %1199 = vmatprep.mubr.msk.f32.mxu1 %vm380_vm0, %v695_v37  ;;  %1245 = vmatpush1.bf16.msra.mxu1 %v1244_v7  ;;  %v815_v10 = vpop.permute.xlu0 %814 }
 0x373   : > { %1247 = vmatprep.subr.bf16.mxu1 %v1246_v11  ;;  %v805_v3 = vpop.permute.xlu1 %804 }
 0x375   : > { %1200 = vmatmul.mubr.msk.f32.gmra.mrb[12].mxu1 %vm380_vm0, %v696_v38 }
 0x376   : > { %1249 = vmatpush1.bf16.msra.mxu1 %v1248_v12  ;;  %922 = vmatprep.mubr.f32.mxu1 %v1350_v1 }
 0x377   : > { %v810_v9 = vpop.permute.xlu1 %809  ;;  %v829_v41 = vpop.permute.xlu0 %828 }
 0x37b   : > { %v820_v39 = vpop.permute.xlu1 %819  ;;  %v844_v14 = vpop.permute.xlu0 %843 }
 0x380   : > { %v834_v43 = vpop.permute.xlu1 %833 }
 0x384   : > { %v839_v55 = vpop.permute.xlu1 %838 }
 0x444   : > { %v1198_v4 = vpop.f32.mrb[10].mxu1 }
 0x445   : > { %v775_v5 = vpop.f32.mrb[11].mxu1  ;;  %v823_v8 = vmul.f32 %v1198_v4, %v810_v9 }
 0x446   : > { %v822_v6 = vmul.f32 %v805_v3, %v775_v5 }
 0x448   : > { %v1201_v7 = vpop.f32.mrb[12].mxu1  ;;  %1085 = vmatmul.mubr.msk.f32.vlgmr.msra.gmra.mrb[14].mxu1 %vm380_vm0, %v822_v6 }
 0x449   : > { %v785_v11 = vpop.f32.mrb[13].mxu1  ;;  %928 = vmatprep.mubr.f32.mxu1 %v1350_v1  ;;  %v825_v40 = vmul.f32 %v1201_v7, %v820_v39 }
 0x44a   : > { %v824_v12 = vmul.f32 %v815_v10, %v785_v11 }
 0x44c   : > { %1086 = vmatmul.mubr.msk.f32.gmra.mrb[16].mxu1 %vm380_vm0, %v823_v8 }
 0x44d   : > { %934 = vmatprep.mubr.f32.mxu1 %v1350_v1 }
 0x450   : > { %1087 = vmatmul.mubr.msk.f32.gmra.mrb[18].mxu1 %vm380_vm0, %v824_v12 }
 0x451   : > { %940 = vmatprep.mubr.f32.mxu1 %v1350_v1 }
 0x454   : > { %1088 = vmatmul.mubr.msk.f32.gmra.mrb[20].mxu1 %vm380_vm0, %v825_v40 }
 0x51b   : > { %v924_v42 = vpop.f32.mrb[14].mxu1 }
 0x51c   : > { %v1554_v44 = vadd.f32 %v924_v42, %v829_v41  ;;  %v926_v45 = vpop.f32.mrb[15].mxu1 }
 0x51d   : > { %v1556_v46 = vadd.f32 %v926_v45, %v829_v41 }
 0x51e   : > { %v947_v47 = vsub.f32 0.0, %v1554_v44 }
 0x51f   : > { %v948_v48 = vsub.f32 0.0, %v1556_v46  ;;  %v930_v49 = vpop.f32.mrb[16].mxu1 }
 0x520   : > { %v955_v50 = vmul.f32 1.442695, %v947_v47  ;;  %v1560_v51 = vadd.f32 %v930_v49, %v834_v43  ;;  %v932_v52 = vpop.f32.mrb[17].mxu1 }
 0x521   : > { %v957_v53 = vmul.f32 1.442695, %v948_v48  ;;  %v1562_v54 = vadd.f32 %v932_v52, %v834_v43 }
 0x522   : > { %1308 = vpow2.f32 %v955_v50  ;;  %v949_v56 = vsub.f32 0.0, %v1560_v51 }
 0x523   : > { %1310 = vpow2.f32 %v957_v53  ;;  %v950_v57 = vsub.f32 0.0, %v1562_v54  ;;  %v936_v58 = vpop.f32.mrb[18].mxu1 }
 0x524   : > { %v959_v59 = vmul.f32 1.442695, %v949_v56  ;;  %v937_v60 = vadd.f32 %v936_v58, %v839_v55  ;;  %v938_v61 = vpop.f32.mrb[19].mxu1 }
 0x525   : > { %v961_v62 = vmul.f32 1.442695, %v950_v57  ;;  %v939_v63 = vadd.f32 %v938_v61, %v839_v55 }
 0x526   : > { %1312 = vpow2.f32 %v959_v59  ;;  %v951_v0 = vsub.f32 0.0, %v937_v60 }
 0x527   : > { %1314 = vpow2.f32 %v961_v62  ;;  %v952_v13 = vsub.f32 0.0, %v939_v63  ;;  %v942_v15 = vpop.f32.mrb[20].mxu1 }
 0x528   : > { %v963_v16 = vmul.f32 1.442695, %v951_v0  ;;  %v943_v17 = vadd.f32 %v942_v15, %v844_v14  ;;  %v944_v18 = vpop.f32.mrb[21].mxu1 }
 0x529   : > { %v965_v19 = vmul.f32 1.442695, %v952_v13  ;;  %v945_v20 = vadd.f32 %v944_v18, %v844_v14 }
 0x52a   : > { %1316 = vpow2.f32 %v963_v16  ;;  %v953_v21 = vsub.f32 0.0, %v943_v17 }
 0x52b   : > { %1318 = vpow2.f32 %v965_v19  ;;  %v954_v22 = vsub.f32 0.0, %v945_v20 }
 0x52c   : > { %v1309_v23 = vpop.eup %1308  ;;  %v967_v24 = vmul.f32 1.442695, %v953_v21 }
 0x52d   : > { %v1311_v25 = vpop.eup %1310  ;;  %v971_v26 = vadd.f32 1.0, %v1309_v23  ;;  %v969_v27 = vmul.f32 1.442695, %v954_v22 }
 0x52e   : > { %v972_v28 = vadd.f32 1.0, %v1311_v25  ;;  %1320 = vpow2.f32 %v967_v24 }
 0x52f   : > { %1322 = vrcp.f32 %v971_v26 }
 0x530   : > { %v1313_v29 = vpop.eup %1312  ;;  %1324 = vrcp.f32 %v972_v28 }
 0x531   : > { %v1315_v30 = vpop.eup %1314  ;;  %v973_v31 = vadd.f32 1.0, %v1313_v29  ;;  %1326 = vpow2.f32 %v969_v27 }
 0x532   : > { %v974_v32 = vadd.f32 1.0, %v1315_v30 }
 0x533   : > { %1328 = vrcp.f32 %v973_v31 }
 0x534   : > { %v1317_v33 = vpop.eup %1316  ;;  %1330 = vrcp.f32 %v974_v32 }
 0x535   : > { %v1319_v34 = vpop.eup %1318  ;;  %v975_v35 = vadd.f32 1.0, %v1317_v33 }
 0x536   : > { %v976_v36 = vadd.f32 1.0, %v1319_v34 }
 0x537   : > { %1332 = vrcp.f32 %v975_v35 }
 0x538   : > { %v1321_v37 = vpop.eup %1320  ;;  %1334 = vrcp.f32 %v976_v36 }
 0x539   : > { %v1323_v38 = vpop.eup %1322  ;;  %v977_v1 = vadd.f32 1.0, %v1321_v37 }
 0x53a   : > { %v1325_v2 = vpop.eup %1324  ;;  %v987_v3 = vmul.f32 %v1323_v38, %v1554_v44 }
 0x53b   : > { %v1327_v4 = vpop.eup %1326  ;;  %v988_v5 = vmul.f32 %v1325_v2, %v1556_v46  ;;  %1336 = vrcp.f32 %v977_v1 }
 0x53c   : > { %995 = vst [vmem:[%s278_s28] sm:$0xff] %v987_v3  ;;  %v978_v6 = vadd.f32 1.0, %v1327_v4 }
 0x53d   : > { %v1329_v7 = vpop.eup %1328  ;;  %996 = vst [vmem:[%s278_s28 + $0x8] sm:$0xff] %v988_v5 }
 0x53e   : > { %v1331_v9 = vpop.eup %1330  ;;  %v989_v11 = vmul.f32 %v1329_v7, %v1560_v51  ;;  %1338 = vrcp.f32 %v978_v6 }
 0x53f   : > { %v990_v8 = vmul.f32 %v1331_v9, %v1562_v54 }
 0x540   : > { %997 = vst [vmem:[%s278_s28 + $0x10] sm:$0xff] %v989_v11 }
 0x541   : > { %v1333_v10 = vpop.eup %1332  ;;  %998 = vst [vmem:[%s278_s28 + $0x18] sm:$0xff] %v990_v8 }
 0x542   : > { %v1335_v12 = vpop.eup %1334  ;;  %v991_v39 = vmul.f32 %v1333_v10, %v937_v60 }
 0x543   : > { %v992_v40 = vmul.f32 %v1335_v12, %v939_v63 }
 0x544   : > { %999 = vst [vmem:[%s278_s28 + $0x20] sm:$0xff] %v991_v39 }
 0x545   : > { %v1337_v41 = vpop.eup %1336  ;;  %1000 = vst [vmem:[%s278_s28 + $0x28] sm:$0xff] %v992_v40 }
 0x546   : > { %v993_v42 = vmul.f32 %v1337_v41, %v943_v17 }
 0x548   : > { %v1339_v43 = vpop.eup %1338  ;;  %1001 = vst [vmem:[%s278_s28 + $0x30] sm:$0xff] %v993_v42 }
 0x549   : > { %v994_v44 = vmul.f32 %v1339_v43, %v945_v20 }
 0x54b   : > { %1002 = vst [vmem:[%s278_s28 + $0x38] sm:$0xff] %v994_v44 }
 0x54c PF: > { %s17_s24 = sadd.s32 1, %s1346_s24  }
 0x54d   : > { %p14_p4 = scmp.ge.s32.totalorder %s17_s24, 4  }
 0x54f   :  { %16 = sbr.rel (!%p14_p4) target bundleno = 1 (0x1), region = 78 }

</bundles_post_ra>
